<compile_context>
chip_gen: v5e
topology: v5e:2x2
jax: 0.10.0
libtpu: 0.0.40
codegen_flags: <defaults>
</compile_context>

<pallas_src>
import jax
import jax.numpy as jnp
from jax.experimental import pallas as pl
from jax.experimental.pallas import tpu as pltpu


def temporal_attention_kernel(h_ref, w_ref, b_ref, hout_ref, wout_ref):
    # h_ref: (T, Bb, D) time-major hidden states for this batch tile
    # w_ref: (D, D) PyTorch Linear weight (out, in); b_ref: (1, D) bias
    h = h_ref[...].astype(jnp.float32)            # (T, Bb, D)
    W = w_ref[...].astype(jnp.float32)            # (D, D)
    bias = b_ref[...].astype(jnp.float32)         # (1, D)
    T = h.shape[0]

    h_last = h[T - 1]                             # (Bb, D) == hidden_states[-1]

    # --- Algebraic rewrite: one small MXU matmul, no (T,B,D) int_vec ----------
    # NOTE: for large D (>= 256) cast h_last / W to bf16 here (keeping
    # preferred_element_type=f32) to hit MXU peak on v6e/v7x; at D=32 the kernel
    # is overhead-bound and the cast is noise, so we stay in f32.
    q = jnp.dot(h_last, W, preferred_element_type=jnp.float32)        # (Bb, D)
    c = jnp.sum(h_last * bias, axis=-1, keepdims=True)                # (Bb, 1)

    # scores[t,b] = <h[t,b], q[b]> : VPU multiply + XLU lane reduce over D.
    scores_tb = jnp.sum(h * q[None, :, :], axis=-1)                   # (T, Bb)

    # --- Softmax over time, computed directly in (Bb, T) orientation ----------
    scores_bt = scores_tb.T + c                                       # (Bb, T)
    m = jnp.max(scores_bt, axis=-1, keepdims=True)                    # (Bb, 1)
    e = jnp.exp(scores_bt - m)
    denom = jnp.sum(e, axis=-1, keepdims=True)                        # (Bb, 1)
    # Exact reciprocal keeps 1e-5 parity with the reference; switch to
    # pl.reciprocal(denom, approx=True) (EUP vrcp, otherwise-idle slot) if a
    # looser tolerance is acceptable.
    weights_bt = e * pl.reciprocal(denom, approx=False)               # (Bb, T)
    wout_ref[...] = weights_bt.astype(wout_ref.dtype)                 # no transpose on store

    # --- Weighted sum over time: hidden_out[b,d] = sum_t w[b,t] * h[t,b,d] ----
    weights_tb = weights_bt.T                                         # (T, Bb) tiny XLU vxpose
    hidden_out = jnp.sum(weights_tb[:, :, None] * h, axis=0)          # (Bb, D)
    hout_ref[...] = hidden_out.astype(hout_ref.dtype)


def _pick_block_b(B: int) -> int:
    """Largest power-of-two batch tile (multiple of 8, <= 256) dividing B, else B."""
    for bb in (256, 128, 64, 32, 16, 8):
        if B % bb == 0:
            return bb
    return B   # small / odd batches: take the whole batch in one block


def temporal_attention(hidden_states, weight, bias):
    """hidden_states: (T, B, D); weight: (D, D) [out, in]; bias: (D,)."""
    T, B, D = hidden_states.shape
    bias2d = bias.reshape(1, D)
    block_b = _pick_block_b(B)
    grid = (B // block_b,)

    # Advisory cost estimate: one (B,D)x(D,D) matmul + O(T*B*D) elementwise work.
    flops = 2 * B * D * D + 4 * T * B * D + 2 * B * D + 6 * B * T
    bytes_accessed = 4 * (T * B * D + D * D + D + B * D + B * T)

    # NOTE: for very long sequences add a second ("arbitrary") grid axis over T
    # with an online-softmax accumulator in VMEM scratch; here a whole
    # (T, block_b, D) tile fits comfortably under the 64 MiB v7x VMEM budget.
    return pl.pallas_call(
        temporal_attention_kernel,
        out_shape=(
            jax.ShapeDtypeStruct((B, D), hidden_states.dtype),
            jax.ShapeDtypeStruct((B, T), hidden_states.dtype),
        ),
        grid_spec=pltpu.PrefetchScalarGridSpec(
            num_scalar_prefetch=0,
            grid=grid,
            in_specs=[
                # hidden states: tiled over batch, full T and D per block
                pl.BlockSpec((T, block_b, D), lambda i: (0, i, 0)),
                # weight / bias stay resident in VMEM across the whole grid
                pl.BlockSpec((D, D), lambda i: (0, 0)),
                pl.BlockSpec((1, D), lambda i: (0, 0)),
            ],
            out_specs=(
                pl.BlockSpec((block_b, D), lambda i: (i, 0)),
                pl.BlockSpec((block_b, T), lambda i: (i, 0)),
            ),
        ),
        compiler_params=pltpu.CompilerParams(
            # batch tiles are independent -> megacore-parallel on v7x (2 TCs)
            dimension_semantics=("parallel",),
        ),
        cost_estimate=pl.CostEstimate(
            flops=flops,
            transcendentals=B * T,
            bytes_accessed=bytes_accessed,
        ),
    )(hidden_states, weight, bias2d)


def temporal_attention_ref(hidden_states, weight, bias):
    # Pure-JAX reference mirroring the PyTorch forward (int_vec formulation).
    int_vec = jnp.einsum("tbd,ed->tbe", hidden_states, weight,
                         precision=jax.lax.Precision.HIGHEST) + bias[None, None, :]
    scores = jnp.sum(hidden_states[-1][None] * int_vec, axis=-1)      # (T, B)
    w = jax.nn.softmax(scores, axis=0)                                # (T, B)
    hidden_out = jnp.sum(w[:, :, None] * hidden_states, axis=0)       # (B, D)
    return hidden_out, w.T                                            # (B,D), (B,T)


if __name__ == "__main__":
    T, B, D = 8, 2, 32   # seq=8, batch=2, hidden=32

    key = jax.random.PRNGKey(0)
    k_h, k_w, k_b = jax.random.split(key, 3)

    hidden_states = jax.random.normal(k_h, (T, B, D), dtype=jnp.float32)

    # nn.Linear(D, D) default init: U(-1/sqrt(D), 1/sqrt(D)) for weight and bias.
    bound = 1.0 / (D ** 0.5)
    weight = jax.random.uniform(k_w, (D, D), minval=-bound, maxval=bound,
                                dtype=jnp.float32)
    bias = jax.random.uniform(k_b, (D,), minval=-bound, maxval=bound,
                              dtype=jnp.float32)

    hidden_out, attn_weights = temporal_attention(hidden_states, weight, bias)
    jax.block_until_ready((hidden_out, attn_weights))

    ref_out, ref_w = temporal_attention_ref(hidden_states, weight, bias)
    assert hidden_out.shape == (B, D) and attn_weights.shape == (B, T)
    # The algebraic rewrite changes the f32 summation order slightly, so the
    # hidden_out comparison gets a touch of extra absolute slack.
    assert jnp.allclose(attn_weights, ref_w, atol=1e-5, rtol=1e-5)
    assert jnp.allclose(hidden_out, ref_out, atol=2e-5, rtol=1e-5)

    print("KERNEL_OK")
</pallas_src>

<mosaic_0001>
module attributes {stable_mosaic.version = 11 : i64} {
  func.func @temporal_attention_kernel(%arg0: i32, %arg1: memref<8x2x32xf32, #tpu.memory_space<vmem>>, %arg2: memref<32x32xf32, #tpu.memory_space<vmem>>, %arg3: memref<1x32xf32, #tpu.memory_space<vmem>>, %arg4: memref<2x32xf32, #tpu.memory_space<vmem>>, %arg5: memref<2x8xf32, #tpu.memory_space<vmem>>) attributes {dimension_semantics = [#tpu.dimension_semantics<parallel>], iteration_bounds = array<i64: 1>, scalar_prefetch = 0 : i64, scratch_operands = 0 : i64, tpu.core_type = #tpu.core_type<tc>, window_params = [{transform_indices = @transform_0, window_bounds = array<i64: 8, 2, 32>}, {pipeline_mode = #tpu.pipeline_mode<synchronous>, transform_indices = @transform_1, window_bounds = array<i64: 32, 32>}, {pipeline_mode = #tpu.pipeline_mode<synchronous>, transform_indices = @transform_2, window_bounds = array<i64: 1, 32>}, {transform_indices = @transform_3, window_bounds = array<i64: 2, 32>}, {transform_indices = @transform_4, window_bounds = array<i64: 2, 8>}]} {
    %c0 = arith.constant 0 : index
    %c0_0 = arith.constant 0 : index
    %c0_1 = arith.constant 0 : index
    %0 = vector.load %arg1[%c0, %c0_0, %c0_1] : memref<8x2x32xf32, #tpu.memory_space<vmem>>, vector<8x2x32xf32>
    %c0_2 = arith.constant 0 : index
    %c0_3 = arith.constant 0 : index
    %1 = vector.load %arg2[%c0_2, %c0_3] : memref<32x32xf32, #tpu.memory_space<vmem>>, vector<32x32xf32>
    %c0_4 = arith.constant 0 : index
    %c0_5 = arith.constant 0 : index
    %2 = vector.load %arg3[%c0_4, %c0_5] : memref<1x32xf32, #tpu.memory_space<vmem>>, vector<1x32xf32>
    %3 = vector.extract_strided_slice %0 {offsets = [7, 0, 0], sizes = [1, 2, 32], strides = [1, 1, 1]} : vector<8x2x32xf32> to vector<1x2x32xf32>
    %4 = vector.shape_cast %3 : vector<1x2x32xf32> to vector<2x32xf32>
    %cst = arith.constant dense<0.000000e+00> : vector<2x32xf32>
    %5 = tpu.matmul %4, %1, %cst {dimension_numbers = #tpu.dot_dimension_numbers<[1], [0], [0], [1], [0, 0, 1, 1], [], []>} : vector<2x32xf32>, vector<32x32xf32>, vector<2x32xf32> -> vector<2x32xf32>
    %6 = vector.broadcast %2 : vector<1x32xf32> to vector<2x32xf32>
    %7 = arith.mulf %4, %6 : vector<2x32xf32>
    %cst_6 = arith.constant dense<0.000000e+00> : vector<2xf32>
    %8 = vector.multi_reduction <add>, %7, %cst_6 [1] : vector<2x32xf32> to vector<2xf32>
    %9 = vector.shape_cast %8 : vector<2xf32> to vector<2x1xf32>
    %10 = vector.shape_cast %5 : vector<2x32xf32> to vector<1x2x32xf32>
    %11 = vector.broadcast %10 : vector<1x2x32xf32> to vector<8x2x32xf32>
    %12 = arith.mulf %0, %11 : vector<8x2x32xf32>
    %cst_7 = arith.constant dense<0.000000e+00> : vector<8x2xf32>
    %13 = vector.multi_reduction <add>, %12, %cst_7 [2] : vector<8x2x32xf32> to vector<8x2xf32>
    %14 = tpu.transpose %13, [1, 0] : vector<8x2xf32> -> vector<2x8xf32>
    %15 = vector.broadcast %9 : vector<2x1xf32> to vector<2x8xf32>
    %16 = arith.addf %14, %15 : vector<2x8xf32>
    %cst_8 = arith.constant dense<0xFF800000> : vector<2xf32>
    %17 = vector.multi_reduction <maximumf>, %16, %cst_8 [1] : vector<2x8xf32> to vector<2xf32>
    %18 = vector.shape_cast %17 : vector<2xf32> to vector<2x1xf32>
    %19 = vector.broadcast %18 : vector<2x1xf32> to vector<2x8xf32>
    %20 = arith.subf %16, %19 : vector<2x8xf32>
    %21 = math.exp %20 : vector<2x8xf32>
    %cst_9 = arith.constant dense<0.000000e+00> : vector<2xf32>
    %22 = vector.multi_reduction <add>, %21, %cst_9 [1] : vector<2x8xf32> to vector<2xf32>
    %23 = vector.shape_cast %22 : vector<2xf32> to vector<2x1xf32>
    %24 = tpu.reciprocal %23 : vector<2x1xf32> -> vector<2x1xf32>
    %25 = vector.broadcast %24 : vector<2x1xf32> to vector<2x8xf32>
    %26 = arith.mulf %21, %25 : vector<2x8xf32>
    %c0_10 = arith.constant 0 : index
    %c0_11 = arith.constant 0 : index
    %27 = vector.load %arg5[%c0_10, %c0_11] : memref<2x8xf32, #tpu.memory_space<vmem>>, vector<2x8xf32>
    tpu.vector_store %arg5[%c0_10, %c0_11], %26 {strides = array<i32>} : memref<2x8xf32, #tpu.memory_space<vmem>>, vector<2x8xf32>,
    %28 = tpu.transpose %26, [1, 0] : vector<2x8xf32> -> vector<8x2xf32>
    %29 = vector.shape_cast %28 : vector<8x2xf32> to vector<8x2x1xf32>
    %30 = vector.broadcast %29 : vector<8x2x1xf32> to vector<8x2x32xf32>
    %31 = arith.mulf %30, %0 : vector<8x2x32xf32>
    %cst_12 = arith.constant dense<0.000000e+00> : vector<2x32xf32>
    %32 = vector.multi_reduction <add>, %31, %cst_12 [0] : vector<8x2x32xf32> to vector<2x32xf32>
    %c0_13 = arith.constant 0 : index
    %c0_14 = arith.constant 0 : index
    %33 = vector.load %arg4[%c0_13, %c0_14] : memref<2x32xf32, #tpu.memory_space<vmem>>, vector<2x32xf32>
    tpu.vector_store %arg4[%c0_13, %c0_14], %32 {strides = array<i32>} : memref<2x32xf32, #tpu.memory_space<vmem>>, vector<2x32xf32>,
    return
  }
  func.func @transform_0(%arg0: i32) -> (i32, i32, i32) {
    %c0_i32 = arith.constant 0 : i32
    %c0_i32_0 = arith.constant 0 : i32
    %c0_i32_1 = arith.constant 0 : i32
    return %c0_i32, %arg0, %c0_i32_0 : i32, i32, i32
  }
  func.func @transform_1(%arg0: i32) -> (i32, i32) {
    %c0_i32 = arith.constant 0 : i32
    %c0_i32_0 = arith.constant 0 : i32
    %c0_i32_1 = arith.constant 0 : i32
    return %c0_i32, %c0_i32_0 : i32, i32
  }
  func.func @transform_2(%arg0: i32) -> (i32, i32) {
    %c0_i32 = arith.constant 0 : i32
    %c0_i32_0 = arith.constant 0 : i32
    %c0_i32_1 = arith.constant 0 : i32
    return %c0_i32, %c0_i32_0 : i32, i32
  }
  func.func @transform_3(%arg0: i32) -> (i32, i32) {
    %c0_i32 = arith.constant 0 : i32
    %c0_i32_0 = arith.constant 0 : i32
    return %arg0, %c0_i32 : i32, i32
  }
  func.func @transform_4(%arg0: i32) -> (i32, i32) {
    %c0_i32 = arith.constant 0 : i32
    %c0_i32_0 = arith.constant 0 : i32
    return %arg0, %c0_i32 : i32, i32
  }
}

</mosaic_0001>

<bundles_post_ra>
// kernel: tpu_custom_call.1
= control target key start
LH: loop header
LB: loop body
LE: loop exit
PB: predicated region body
PF: predicated region fallthrough
CT: control target
= control target key end

     0   :  { %10 = vsyncpa [#allocation3], 0  ;;  %s590_s0 = inlined_call_operand.hbm [shape: f32[8,2,32], index: 0, kind: input, shape index: {}]   ;;  %s591_s1 = inlined_call_operand.hbm [shape: f32[32,32], index: 1, kind: input, shape index: {}]   ;;  %s592_s2 = inlined_call_operand.vmem [shape: f32[1,32], index: 2, kind: input, shape index: {}]   ;;  %s593_s3 = inlined_call_operand.hbm [shape: f32[2,32], index: 3, kind: output, shape index: {0}]   ;;  %s594_s4 = inlined_call_operand.hbm [shape: f32[2,8], index: 4, kind: output, shape index: {1}]  }
   0x1   :  { %11 = vsyncpa [#allocation6], 0 }
   0x2   :  { %12 = vsyncpa [#allocation4], 0 }
   0x3   :  { %13 = vsyncpa [#allocation9], 0  ;;  %s18_s17 = sshll.u32 %s590_s0, 4  ;;  %s487_s18 = smov [#allocation2]   ;;  %s19_s17 = int_to_ptr.hbm [resolvable:$true] %s18_s17 }
   0x4   :  { %s20_s19 = sshll.u32 %s487_s18, 4  ;;  %s31_s22 = sshll.u32 %s591_s1, 4  ;;  %s21_s19 = int_to_ptr.vmem [resolvable:$true] %s20_s19  ;;  %s32_s22 = int_to_ptr.hbm [resolvable:$true] %s31_s22 }
   0x5   :  { %s488_s23 = smov 32   ;;  %s489_s24 = smov 2  }
   0x6   :  { %26 = dma.hbm_to_vmem [thread:$0]  %s19_s17, 256, %s21_s19, [#allocation3], %s488_s23, %s488_s23, %s489_s24  }
   0x7   :  { %s490_s25 = smov [#allocation5]   ;;  %s491_s27 = smov 128  }
   0x8   :  { %s33_s26 = sshll.u32 %s490_s25, 4  ;;  %s492_s28 = smov 8   ;;  %s34_s26 = int_to_ptr.vmem [resolvable:$true] %s33_s26 }
   0x9   :  { %39 = dma.hbm_to_vmem [thread:$0]  %s32_s22, 512, %s34_s26, [#allocation6], %s491_s27, %s491_s27, %s492_s28  }
   0xa   :  { %479 = dma.done.wait [#allocation3], 256  }
   0xb   :  { %480 = vsyncadd [#allocation3], 4294967040 }
   0xc   :  { %481 = dma.done.wait [#allocation6], 512  }
   0xd   :  { %482 = vsyncadd [#allocation6], 4294966784  ;;  %v61_v0 = vld [vmem:[#allocation5 + $0x18] sm:$0xff]  ;;  %v60_v1 = vld [vmem:[#allocation5 + $0x10] sm:$0xff]  ;;  %vm63_vm0 = vcmask 261120   ;;  %vm91_vm1 = vcmask 254976   ;;  %v135_v34 = vlaneseq }
   0xe   :  { %79 = vmatpush.msra.mxu0 %v61_v0  ;;  %v59_v2 = vld [vmem:[#allocation5 + $0x8] sm:$0xff]  ;;  %v58_v3 = vld [vmem:[#allocation5] sm:$0xff]  ;;  %v526_v4 = vld [vmem:[#allocation2 + $0xe] sm:$0x3]  ;;  %vm145_vm2 = vcmask 1041409   ;;  %vm147_vm3 = vcmask 1042434  }
   0xf   :  { %v529_v5 = vld [vmem:[#allocation2 + $0x8] sm:$0x3]  ;;  %v531_v6 = vld [vmem:[#allocation2 + $0x4] sm:$0x3]  ;;  %v533_v7 = vld [vmem:[#allocation2] sm:$0x3] }
  0x10   :  { %80 = vmatpush.msra.mxu0 %v60_v1  ;;  %v541_v15 = vld [vmem:[#allocation2 + $0xa] sm:$0x3]  ;;  %v543_v16 = vld [vmem:[#allocation2 + $0x6] sm:$0x3]  ;;  %v545_v17 = vld [vmem:[#allocation2 + $0x2] sm:$0x3] }
  0x11   :  { %v553_v24 = vld [vmem:[#allocation2 + $0xc] sm:$0x3]  ;;  %v378_v29 = vld [vmem:[%s592_s2] ss:$0 sm:$0xff]  ;;  %v136_v36 = vand.u32 127, %v135_v34  ;;  %vm149_vm4 = vcmask 1043459  }
  0x12   :  { %81 = vmatpush.msra.mxu0 %v59_v2  ;;  %v90_v30 = vmul.f32 %v378_v29, %v526_v4  ;;  %vm151_vm5 = vcmask 1044484   ;;  %vm153_vm6 = vcmask 1045509   ;;  %vm155_vm7 = vcmask 1046534   ;;  %s493_s2 = smov [#allocation8]   ;;  %s349_s6 = sshll.u32 %s594_s4, 4  ;;  %s350_s6 = int_to_ptr.hbm [resolvable:$true] %s349_s6 }
  0x13   :  { %vm157_vm8 = vcmask 1047559   ;;  %vm193_vm9 = vcmask 58368   ;;  %v253_v2 = vshrl.u32 %v135_v34, 7  ;;  %s347_s29 = sshll.u32 %s493_s2, 4  ;;  %s494_s4 = smov [#allocation7]   ;;  %s348_s29 = int_to_ptr.vmem [resolvable:$true] %s347_s29 }
  0x14   :  { %82 = vmatpush.msra.mxu0 %v58_v3  ;;  %v92_v31 = vsel %vm91_vm1, %v90_v30, 0.0  ;;  %s336_s7 = sshll.u32 %s494_s4, 4  ;;  %s338_s10 = sshll.u32 %s593_s3, 4  ;;  %s337_s7 = int_to_ptr.vmem [resolvable:$true] %s336_s7  ;;  %s339_s10 = int_to_ptr.hbm [resolvable:$true] %s338_s10 }
  0x15   :  { %365 = vmatmul.msk.f32.vlgmr.msra.gmra.mxu0 %vm63_vm0, %v526_v4  ;;  %375 = vset.pattern.permute.xlu2 %v253_v2 }
  0x92   :  { %v84_v8 = vpop.f32.mrf.mxu0 }
  0x93   :  { %v99_v9 = vmul.f32 %v84_v8, %v529_v5  ;;  %v97_v10 = vmul.f32 %v84_v8, %v531_v6  ;;  %v95_v11 = vmul.f32 %v84_v8, %v533_v7  ;;  %v100_v18 = vmul.f32 %v84_v8, %v541_v15 }
  0x94   :  { %v98_v19 = vmul.f32 %v84_v8, %v543_v16  ;;  %v96_v20 = vmul.f32 %v84_v8, %v545_v17  ;;  %v102_v25 = vmul.f32 %v84_v8, %v526_v4  ;;  %v101_v26 = vmul.f32 %v84_v8, %v553_v24 }
  0x95   :  { %v115_v12 = vsel %vm91_vm1, %v99_v9, 0.0  ;;  %v109_v13 = vsel %vm91_vm1, %v97_v10, 0.0  ;;  %v103_v14 = vsel %vm91_vm1, %v95_v11, 0.0  ;;  %v118_v21 = vsel %vm91_vm1, %v100_v18, 0.0 }
  0x96   :  { %116 = vadd.xlane.f32.xlu2 %v115_v12  ;;  %110 = vadd.xlane.f32.xlu1 %v109_v13  ;;  %v112_v22 = vsel %vm91_vm1, %v98_v19, 0.0  ;;  %v106_v23 = vsel %vm91_vm1, %v96_v20, 0.0  ;;  %v124_v27 = vsel %vm91_vm1, %v102_v25, 0.0  ;;  %v121_v28 = vsel %vm91_vm1, %v101_v26, 0.0 }
  0x97   :  { %104 = vadd.xlane.f32.xlu0 %v103_v14 }
  0x9e   :  { %119 = vadd.xlane.f32.xlu2 %v118_v21  ;;  %113 = vadd.xlane.f32.xlu1 %v112_v22 }
  0x9f   :  { %107 = vadd.xlane.f32.xlu0 %v106_v23 }
  0xa6   :  { %125 = vadd.xlane.f32.xlu1 %v124_v27  ;;  %93 = vadd.xlane.f32.xlu2 %v92_v31 }
  0xa7   :  { %122 = vadd.xlane.f32.xlu0 %v121_v28 }
 0x109   :  { %v111_v32 = vpop.xlane.xlu1 %110  ;;  %v117_v35 = vpop.xlane.xlu2 %116 }
 0x10a   :  { %v105_v33 = vpop.xlane.xlu0 %104  ;;  %v139_v41 = vperm.slane %v111_v32, %v136_v36  ;;  %v141_v45 = vperm.slane %v117_v35, %v136_v36 }
 0x10b   :  { %v137_v39 = vperm.slane %v105_v33, %v136_v36 }
 0x111   :  { %v114_v37 = vpop.xlane.xlu1 %113  ;;  %v120_v46 = vpop.xlane.xlu2 %119 }
 0x112   :  { %v108_v38 = vpop.xlane.xlu0 %107  ;;  %v140_v42 = vperm.slane %v114_v37, %v136_v36  ;;  %v142_v50 = vperm.slane %v120_v46, %v136_v36 }
 0x113   :  { %v138_v40 = vperm.slane %v108_v38, %v136_v36 }
 0x115   :  { %v146_v43 = vsel %vm145_vm2, %v138_v40, %v137_v39 }
 0x116   :  { %v148_v44 = vsel %vm147_vm3, %v139_v41, %v146_v43 }
 0x117   :  { %v150_v47 = vsel %vm149_vm4, %v140_v42, %v148_v44 }
 0x118   :  { %v152_v49 = vsel %vm151_vm5, %v141_v45, %v150_v47 }
 0x119   :  { %v126_v48 = vpop.xlane.xlu1 %125  ;;  %v154_v54 = vsel %vm153_vm6, %v142_v50, %v152_v49  ;;  %v94_v57 = vpop.xlane.xlu2 %93 }
 0x11a   :  { %v144_v51 = vperm.slane %v126_v48, %v136_v36  ;;  %v123_v52 = vpop.xlane.xlu0 %122 }
 0x11b   :  { %v143_v53 = vperm.slane %v123_v52, %v136_v36 }
 0x11d   :  { %v156_v55 = vsel %vm155_vm7, %v143_v53, %v154_v54 }
 0x11e   :  { %v158_v56 = vsel %vm157_vm8, %v144_v51, %v156_v55 }
 0x11f   :  { %160 = vxpose.xlu0.b32.start.end [1/1] (short) (narrow) %v158_v56, 8 }
 0x186   :  { %376 = vset.pattern.permute.xlu0 %v253_v2 }
 0x1c3   :  { %v176_v58 = vpop.trf.xlu0 }
 0x1c4   :  { %v192_v59 = vadd.f32 %v176_v58, %v94_v57 }
 0x1c6   :  { %v194_v60 = vsel %vm193_vm9, %v192_v59, -inf }
 0x1c7   :  { %195 = vmax.xlane.f32.xlu1 %v194_v60 }
 0x23a   :  { %v196_v61 = vpop.xlane.xlu1 %195 }
 0x23b   :  { %v197_v62 = vsub.f32 %v192_v59, %v196_v61 }
 0x23d   :  { %v198_v63 = vmul.f32 1.442695, %v197_v62 }
 0x23f   :  { %379 = vpow2.f32 %v198_v63 }
 0x245   :  { %v380_v0 = vpop.eup %379 }
 0x246   :  { %v200_v1 = vsel %vm193_vm9, %v380_v0, 0.0 }
 0x247   :  { %201 = vadd.xlane.f32.xlu2 %v200_v1 }
 0x2ba   :  { %v202_v3 = vpop.xlane.xlu2 %201 }
 0x2bb   :  { %381 = vrcp.f32 %v202_v3  ;;  %v214_v11 = vand.u32 2147483648, %v202_v3  ;;  %v212_v13 = vand.u32 2147483647, %v202_v3  ;;  %vm208_vm11 = vweird.f32 %v202_v3 }
 0x2bd   :  { %v215_v18 = vor.u32 1.1754944e-38, %v214_v11  ;;  %vm213_vm13 = vcmp.eq.f32.partialorder %v212_v13, 8.507059e+37 }
 0x2c1   :  { %v382_v8 = vpop.eup %381 }
 0x2c2   :  { %v204_v9 = vmul.f32 %v382_v8, %v202_v3  ;;  %vm209_vm10 = vweird.f32 %v382_v8 }
 0x2c3   :  { %vm210_vm12 = vmor %vm208_vm11, %vm209_vm10 }
 0x2c4   :  { %v205_v10 = vsub.f32 1.0, %v204_v9 }
 0x2c6   :  { %v206_v12 = vmul.f32 %v382_v8, %v205_v10 }
 0x2c8   :  { %v207_v14 = vadd.f32 %v382_v8, %v206_v12 }
 0x2ca   :  { %v211_v19 = vsel %vm210_vm12, %v382_v8, %v207_v14 }
 0x2cb   :  { %v216_v20 = vsel %vm213_vm13, %v215_v18, %v211_v19 }
 0x2cc   :  { %v217_v21 = vmul.f32 %v380_v0, %v216_v20 }
 0x2ce   :  { %219 = vxpose.xlu1.b32.start.end [1/1] (short) (narrow) %v217_v21, 8  ;;  %218 = vst.msk [vmem:[#allocation8] sm:$0x3] %vm193_vm9, %v217_v21 }
 0x2cf   :  { %352 = dma.vmem_to_hbm [thread:$0]  %s348_s29, 32, %s350_s6, [#allocation9]  }
 0x321   :  { %377 = vset.pattern.permute.xlu1 %v253_v2 }
 0x372   :  { %v235_v22 = vpop.trf.xlu1 }
 0x373   :  { %v300_v23 = vperm.slane %v235_v22, 7  ;;  %v272_v25 = vperm.slane %v235_v22, 3  ;;  %v251_v26 = vperm.slane %v235_v22, 0  ;;  %v258_v27 = vperm.slane %v235_v22, 1 }
 0x374   :  { %v265_v28 = vperm.slane %v235_v22, 2  ;;  %v279_v29 = vperm.slane %v235_v22, 4  ;;  %v286_v30 = vperm.slane %v235_v22, 5  ;;  %v293_v31 = vperm.slane %v235_v22, 6 }
 0x375   :  { %305 = vperm.xlu1 %377, %v300_v23   ;;  %277 = vperm.xlu0 %376, %v272_v25  }
 0x376   :  { %256 = vperm.xlu2 %375, %v251_v26  }
 0x37e   :  { %263 = vperm.xlu2 %375, %v258_v27  }
 0x386   :  { %270 = vperm.xlu2 %375, %v265_v28  }
 0x38e   :  { %284 = vperm.xlu2 %375, %v279_v29  }
 0x396   :  { %291 = vperm.xlu2 %375, %v286_v30  }
 0x39e   :  { %298 = vperm.xlu2 %375, %v293_v31  }
 0x3d0   :  { %v257_v32 = vpop.permute.xlu2 %256 }
 0x3d1   :  { %v307_v38 = vmul.f32 %v257_v32, %v533_v7 }
 0x3d3   :  { %v315_v42 = vsel %vm91_vm1, %v307_v38, 0.0 }
 0x3d8   :  { %v264_v33 = vpop.permute.xlu2 %263 }
 0x3d9   :  { %v308_v36 = vmul.f32 %v264_v33, %v545_v17 }
 0x3db   :  { %v316_v40 = vsel %vm91_vm1, %v308_v36, 0.0 }
 0x3dc   :  { %v317_v44 = vadd.f32 %v316_v40, %v315_v42 }
 0x3e0   :  { %v271_v34 = vpop.permute.xlu2 %270 }
 0x3e1   :  { %v309_v39 = vmul.f32 %v271_v34, %v531_v6 }
 0x3e3   :  { %v318_v43 = vsel %vm91_vm1, %v309_v39, 0.0 }
 0x3e4   :  { %v319_v47 = vadd.f32 %v318_v43, %v317_v44 }
 0x3e7   :  { %v278_v37 = vpop.permute.xlu0 %277  ;;  %v306_v49 = vpop.permute.xlu1 %305 }
 0x3e8   :  { %v285_v35 = vpop.permute.xlu2 %284  ;;  %v310_v41 = vmul.f32 %v278_v37, %v543_v16  ;;  %v314_v52 = vmul.f32 %v306_v49, %v526_v4 }
 0x3e9   :  { %v311_v17 = vmul.f32 %v285_v35, %v529_v5 }
 0x3ea   :  { %v320_v46 = vsel %vm91_vm1, %v310_v41, 0.0 }
 0x3eb   :  { %v321_v7 = vadd.f32 %v320_v46, %v319_v47  ;;  %v322_v6 = vsel %vm91_vm1, %v311_v17, 0.0 }
 0x3ed   :  { %v323_v16 = vadd.f32 %v322_v6, %v321_v7 }
 0x3f0   :  { %v292_v45 = vpop.permute.xlu2 %291 }
 0x3f1   :  { %v312_v48 = vmul.f32 %v292_v45, %v541_v15  ;;  %v328_v15 = vsel %vm91_vm1, %v314_v52, 0.0 }
 0x3f3   :  { %v324_v50 = vsel %vm91_vm1, %v312_v48, 0.0 }
 0x3f4   :  { %v325_v54 = vadd.f32 %v324_v50, %v323_v16 }
 0x3f8   :  { %v299_v51 = vpop.permute.xlu2 %298 }
 0x3f9   :  { %v313_v53 = vmul.f32 %v299_v51, %v553_v24 }
 0x3fb   :  { %v326_v55 = vsel %vm91_vm1, %v313_v53, 0.0 }
 0x3fc   :  { %v327_v5 = vadd.f32 %v326_v55, %v325_v54 }
 0x3fe   :  { %v329_v56 = vadd.f32 %v328_v15, %v327_v5 }
 0x400   :  { %330 = vst.msk [vmem:[#allocation7] sm:$0x3] %vm91_vm1, %v329_v56 }
 0x401   :  { %341 = dma.vmem_to_hbm [thread:$0]  %s337_s7, 32, %s339_s10, [#allocation4]  }
 0x402   :  { %483 = dma.done.wait [#allocation4], 32  }
 0x403   :  { %484 = vsyncadd [#allocation4], 4294967264 }
 0x404   :  { %485 = dma.done.wait [#allocation9], 32  }
 0x405   :  { %486 = vsyncadd [#allocation9], 4294967264 }
 0x406   :  { %361 = vsyncpa [#allocation3], 1 }
 0x407   :  { %362 = vsyncpa [#allocation6], 1 }
 0x408   :  { %363 = vsyncpa [#allocation4], 1 }
 0x409   :  { %364 = vsyncpa [#allocation9], 1 }

</bundles_post_ra>
